<compile_context>
chip_gen: v5e
topology: v5e:2x2
jax: 0.10.0
libtpu: 0.0.40
codegen_flags: <defaults>
</compile_context>

<pallas_src>
import functools

import jax
import jax.numpy as jnp
from jax.experimental import pallas as pl
from jax.experimental.pallas import tpu as pltpu  # noqa: F401  (CompilerParams for future tuning)


def self_attention_kernel(q_ref, k_ref, v_ref,
                          wq_ref, wk_ref, wv_ref, wo_ref,
                          gamma_ref, beta_ref, wf_ref,
                          out_ref, *, num_heads, eps):
    B, S, D = q_ref.shape
    H = num_heads
    Dk = wq_ref.shape[1]
    Dv = wv_ref.shape[1]
    dk_h = Dk // H
    dv_h = Dv // H
    N = B * S

    x_q = q_ref[...]                               # [B, S, D]

    # --- Q/K/V projections: one full-width MXU matmul per tensor.
    # (query_scale already folded into wq; dropout p=0.0 / bias_mask=None are
    #  identities and omitted.)
    x2_q = x_q.reshape(N, D)
    x2_k = k_ref[...].reshape(N, D)
    x2_v = v_ref[...].reshape(N, D)
    q3 = jnp.dot(x2_q, wq_ref[...], preferred_element_type=jnp.float32).reshape(B, S, Dk)
    k3 = jnp.dot(x2_k, wk_ref[...], preferred_element_type=jnp.float32).reshape(B, S, Dk)
    v3 = jnp.dot(x2_v, wv_ref[...], preferred_element_type=jnp.float32).reshape(B, S, Dv)

    # --- Attention core: per-head *views* (static lane slices) of the
    # full-width projections; B-batched tiny matmuls per head (unavoidable
    # given the head structure), heads unrolled at trace time.
    ctx_heads = []
    for h in range(H):
        qh = q3[:, :, h * dk_h:(h + 1) * dk_h]     # [B, S, dk_h]
        kh = k3[:, :, h * dk_h:(h + 1) * dk_h]     # [B, S, dk_h]
        vh = v3[:, :, h * dv_h:(h + 1) * dv_h]     # [B, S, dv_h]
        logits = jnp.einsum('bqd,bkd->bqk', qh, kh,
                            preferred_element_type=jnp.float32)   # [B, S, S]
        m = jnp.max(logits, axis=-1, keepdims=True)
        e = jnp.exp(logits - m)
        denom = jnp.sum(e, axis=-1, keepdims=True)
        # EUP reciprocal + VPU multiply instead of a VALU divide.
        # (approx=True is a further free win; kept exact to stay within 1e-4 of ref.)
        w = e * pl.reciprocal(denom, approx=False)
        ctx_heads.append(jnp.einsum('bqk,bkd->bqd', w, vh,
                                    preferred_element_type=jnp.float32))  # [B, S, dv_h]

    # --- Head merge (one lane relayout) fused into ONE output-projection matmul.
    ctx = jnp.concatenate(ctx_heads, axis=-1)                       # [B, S, Dv]
    outputs = jnp.dot(ctx.reshape(N, Dv), wo_ref[...],
                      preferred_element_type=jnp.float32).reshape(B, S, D)

    # --- Residual + LayerNorm (matches nn.LayerNorm: eps=1e-5, biased variance).
    x = x_q + outputs
    mean = jnp.mean(x, axis=-1, keepdims=True)
    var = jnp.mean((x - mean) ** 2, axis=-1, keepdims=True)
    x_ln = (x - mean) * jax.lax.rsqrt(var + eps) * gamma_ref[...] + beta_ref[...]

    # --- Final Linear over the flattened [S*D] sequence as ONE matmul:
    #   [B, S*D] @ [S*D, OD_pad]  (M=B, K=S*D, lane-dense N=OD_pad).
    # The flatten uses static lane-concat (a plain supported relayout) instead
    # of a lane-splitting reshape or an M=1 row-batched matmul chain.
    x_flat = jnp.concatenate([x_ln[:, s, :] for s in range(S)], axis=-1)   # [B, S*D]
    out_ref[...] = jnp.dot(x_flat, wf_ref[...],
                           preferred_element_type=jnp.float32)             # [B, OD_pad]


def self_attention_forward(queries, keys, values, params, *, num_heads):
    B, S, D = queries.shape
    OD = params["wf"].shape[0]
    dk_h = params["wq"].shape[0] // num_heads
    query_scale = float(dk_h ** -0.5)

    # Un-replicated weights; PyTorch [out, in] -> [in, out]. query_scale folded into Wq.
    wq_t = (params["wq"] * query_scale).T          # [D, Dk]
    wk_t = params["wk"].T                          # [D, Dk]
    wv_t = params["wv"].T                          # [D, Dv]
    wo_t = params["wo"].T                          # [Dv, D]

    gamma = params["gamma"].reshape(1, 1, D)
    beta = params["beta"].reshape(1, 1, D)

    # Final weight: [OD, S*D] -> [S*D, OD], zero-padded to a lane-dense multiple
    # of 128 so the single output store is unmasked; padding sliced off below.
    OD_pad = ((OD + 127) // 128) * 128
    wf_t = jnp.pad(params["wf"].T, ((0, 0), (0, OD_pad - OD)))     # [S*D, OD_pad]

    kernel = functools.partial(self_attention_kernel, num_heads=num_heads, eps=1e-5)

    # Single fused grid-less invocation: every operand fits trivially in VMEM
    # (< 1 MiB total), so whole-array VMEM refs are used.
    # TODO(synk): for large B, add a leading grid axis over B with
    # dimension_semantics=("parallel",) to shard across v7x's 2 TensorCores, set
    # vmem_limit_bytes explicitly, and cast matmul operands to bf16 (f32 accum)
    # once shapes are large enough to be MXU-bound.
    out = pl.pallas_call(
        kernel,
        out_shape=jax.ShapeDtypeStruct((B, OD_pad), jnp.float32),
    )(queries, keys, values, wq_t, wk_t, wv_t, wo_t, gamma, beta, wf_t)
    return out[:, :OD]


def self_attention_reference(queries, keys, values, params, *, num_heads):
    """Pure-JAX mirror of the PyTorch forward for verification."""
    B, S, D = queries.shape
    Dk = params["wq"].shape[0]
    Dv = params["wv"].shape[0]
    scale = (Dk // num_heads) ** -0.5

    def split(x):
        b, s, d = x.shape
        return x.reshape(b, s, num_heads, d // num_heads).transpose(0, 2, 1, 3)

    q = queries @ params["wq"].T
    k = keys @ params["wk"].T
    v = values @ params["wv"].T
    q, k, v = split(q) * scale, split(k), split(v)
    logits = jnp.einsum("bhqd,bhkd->bhqk", q, k)
    w = jax.nn.softmax(logits, axis=-1)
    ctx = jnp.einsum("bhqk,bhkd->bhqd", w, v)
    ctx = ctx.transpose(0, 2, 1, 3).reshape(B, S, Dv)
    out = ctx @ params["wo"].T
    x = queries + out
    mean = jnp.mean(x, axis=-1, keepdims=True)
    var = jnp.mean((x - mean) ** 2, axis=-1, keepdims=True)
    x_ln = (x - mean) * jax.lax.rsqrt(var + 1e-5) * params["gamma"] + params["beta"]
    return x_ln.reshape(B, S * D) @ params["wf"].T


if __name__ == "__main__":
    # Small shapes consistent with the module's constraints.
    B, S = 2, 8
    input_depth = 32
    total_key_depth = 32
    total_value_depth = 32
    output_depth = 64
    num_heads = 4

    key = jax.random.PRNGKey(0)
    ks = jax.random.split(key, 8)
    params = {
        "wq": 0.1 * jax.random.normal(ks[0], (total_key_depth, input_depth), jnp.float32),
        "wk": 0.1 * jax.random.normal(ks[1], (total_key_depth, input_depth), jnp.float32),
        "wv": 0.1 * jax.random.normal(ks[2], (total_value_depth, input_depth), jnp.float32),
        "wo": 0.1 * jax.random.normal(ks[3], (input_depth, total_value_depth), jnp.float32),
        "wf": 0.1 * jax.random.normal(ks[4], (output_depth, input_depth * S), jnp.float32),
        "gamma": jnp.ones((input_depth,), jnp.float32),
        "beta": jnp.zeros((input_depth,), jnp.float32),
    }
    queries = jax.random.normal(ks[5], (B, S, input_depth), jnp.float32)
    keys_in = jax.random.normal(ks[6], (B, S, input_depth), jnp.float32)
    values = jax.random.normal(ks[7], (B, S, input_depth), jnp.float32)

    out = self_attention_forward(queries, keys_in, values, params, num_heads=num_heads)
    out = jax.block_until_ready(out)

    ref = self_attention_reference(queries, keys_in, values, params, num_heads=num_heads)
    assert out.shape == (B, output_depth), out.shape
    assert jnp.allclose(out, ref, atol=1e-4, rtol=1e-4), \
        f"max err {jnp.max(jnp.abs(out - ref))}"
    print("KERNEL_OK")
</pallas_src>

<mosaic_0001>
module attributes {stable_mosaic.version = 11 : i64} {
  func.func @self_attention_kernel(%arg0: memref<2x8x32xf32, #tpu.memory_space<vmem>>, %arg1: memref<2x8x32xf32, #tpu.memory_space<vmem>>, %arg2: memref<2x8x32xf32, #tpu.memory_space<vmem>>, %arg3: memref<32x32xf32, #tpu.memory_space<vmem>>, %arg4: memref<32x32xf32, #tpu.memory_space<vmem>>, %arg5: memref<32x32xf32, #tpu.memory_space<vmem>>, %arg6: memref<32x32xf32, #tpu.memory_space<vmem>>, %arg7: memref<1x1x32xf32, #tpu.memory_space<vmem>>, %arg8: memref<1x1x32xf32, #tpu.memory_space<vmem>>, %arg9: memref<256x128xf32, #tpu.memory_space<vmem>>, %arg10: memref<2x128xf32, #tpu.memory_space<vmem>>) attributes {dimension_semantics = [], scalar_prefetch = 0 : i64, scratch_operands = 0 : i64, tpu.core_type = #tpu.core_type<tc>} {
    %c0 = arith.constant 0 : index
    %c0_0 = arith.constant 0 : index
    %c0_1 = arith.constant 0 : index
    %0 = vector.load %arg0[%c0, %c0_0, %c0_1] : memref<2x8x32xf32, #tpu.memory_space<vmem>>, vector<2x8x32xf32>
    %1 = vector.shape_cast %0 : vector<2x8x32xf32> to vector<16x32xf32>
    %c0_2 = arith.constant 0 : index
    %c0_3 = arith.constant 0 : index
    %c0_4 = arith.constant 0 : index
    %2 = vector.load %arg1[%c0_2, %c0_3, %c0_4] : memref<2x8x32xf32, #tpu.memory_space<vmem>>, vector<2x8x32xf32>
    %3 = vector.shape_cast %2 : vector<2x8x32xf32> to vector<16x32xf32>
    %c0_5 = arith.constant 0 : index
    %c0_6 = arith.constant 0 : index
    %c0_7 = arith.constant 0 : index
    %4 = vector.load %arg2[%c0_5, %c0_6, %c0_7] : memref<2x8x32xf32, #tpu.memory_space<vmem>>, vector<2x8x32xf32>
    %5 = vector.shape_cast %4 : vector<2x8x32xf32> to vector<16x32xf32>
    %c0_8 = arith.constant 0 : index
    %c0_9 = arith.constant 0 : index
    %6 = vector.load %arg3[%c0_8, %c0_9] : memref<32x32xf32, #tpu.memory_space<vmem>>, vector<32x32xf32>
    %cst = arith.constant dense<0.000000e+00> : vector<16x32xf32>
    %7 = tpu.matmul %1, %6, %cst {dimension_numbers = #tpu.dot_dimension_numbers<[1], [0], [0], [1], [0, 0, 1, 1], [], []>} : vector<16x32xf32>, vector<32x32xf32>, vector<16x32xf32> -> vector<16x32xf32>
    %8 = vector.shape_cast %7 : vector<16x32xf32> to vector<2x8x32xf32>
    %c0_10 = arith.constant 0 : index
    %c0_11 = arith.constant 0 : index
    %9 = vector.load %arg4[%c0_10, %c0_11] : memref<32x32xf32, #tpu.memory_space<vmem>>, vector<32x32xf32>
    %cst_12 = arith.constant dense<0.000000e+00> : vector<16x32xf32>
    %10 = tpu.matmul %3, %9, %cst_12 {dimension_numbers = #tpu.dot_dimension_numbers<[1], [0], [0], [1], [0, 0, 1, 1], [], []>} : vector<16x32xf32>, vector<32x32xf32>, vector<16x32xf32> -> vector<16x32xf32>
    %11 = vector.shape_cast %10 : vector<16x32xf32> to vector<2x8x32xf32>
    %c0_13 = arith.constant 0 : index
    %c0_14 = arith.constant 0 : index
    %12 = vector.load %arg5[%c0_13, %c0_14] : memref<32x32xf32, #tpu.memory_space<vmem>>, vector<32x32xf32>
    %cst_15 = arith.constant dense<0.000000e+00> : vector<16x32xf32>
    %13 = tpu.matmul %5, %12, %cst_15 {dimension_numbers = #tpu.dot_dimension_numbers<[1], [0], [0], [1], [0, 0, 1, 1], [], []>} : vector<16x32xf32>, vector<32x32xf32>, vector<16x32xf32> -> vector<16x32xf32>
    %14 = vector.shape_cast %13 : vector<16x32xf32> to vector<2x8x32xf32>
    %15 = vector.extract_strided_slice %8 {offsets = [0, 0, 0], sizes = [2, 8, 8], strides = [1, 1, 1]} : vector<2x8x32xf32> to vector<2x8x8xf32>
    %16 = vector.extract_strided_slice %11 {offsets = [0, 0, 0], sizes = [2, 8, 8], strides = [1, 1, 1]} : vector<2x8x32xf32> to vector<2x8x8xf32>
    %17 = vector.extract_strided_slice %14 {offsets = [0, 0, 0], sizes = [2, 8, 8], strides = [1, 1, 1]} : vector<2x8x32xf32> to vector<2x8x8xf32>
    "tpu.trace_start"() <{level = 10 : i32, message = "bqd,bkd->bqk"}> : () -> ()
    %cst_16 = arith.constant dense<0.000000e+00> : vector<2x8x8xf32>
    %18 = tpu.matmul %15, %16, %cst_16 {dimension_numbers = #tpu.dot_dimension_numbers<[2], [2], [1], [1], [0, 0, 0, 1, 1, 1], [0], [0]>} : vector<2x8x8xf32>, vector<2x8x8xf32>, vector<2x8x8xf32> -> vector<2x8x8xf32>
    "tpu.trace_stop"() : () -> ()
    %cst_17 = arith.constant dense<0xFF800000> : vector<2x8xf32>
    %19 = vector.multi_reduction <maximumf>, %18, %cst_17 [2] : vector<2x8x8xf32> to vector<2x8xf32>
    %20 = vector.shape_cast %19 : vector<2x8xf32> to vector<2x8x1xf32>
    %21 = vector.broadcast %20 : vector<2x8x1xf32> to vector<2x8x8xf32>
    %22 = arith.subf %18, %21 : vector<2x8x8xf32>
    %23 = math.exp %22 : vector<2x8x8xf32>
    %cst_18 = arith.constant dense<0.000000e+00> : vector<2x8xf32>
    %24 = vector.multi_reduction <add>, %23, %cst_18 [2] : vector<2x8x8xf32> to vector<2x8xf32>
    %25 = vector.shape_cast %24 : vector<2x8xf32> to vector<2x8x1xf32>
    %26 = tpu.reciprocal %25 : vector<2x8x1xf32> -> vector<2x8x1xf32>
    %27 = vector.broadcast %26 : vector<2x8x1xf32> to vector<2x8x8xf32>
    %28 = arith.mulf %23, %27 : vector<2x8x8xf32>
    "tpu.trace_start"() <{level = 10 : i32, message = "bqk,bkd->bqd"}> : () -> ()
    %cst_19 = arith.constant dense<0.000000e+00> : vector<2x8x8xf32>
    %29 = tpu.matmul %28, %17, %cst_19 {dimension_numbers = #tpu.dot_dimension_numbers<[2], [1], [1], [2], [0, 0, 0, 1, 1, 2], [0], [0]>} : vector<2x8x8xf32>, vector<2x8x8xf32>, vector<2x8x8xf32> -> vector<2x8x8xf32>
    "tpu.trace_stop"() : () -> ()
    %30 = vector.extract_strided_slice %8 {offsets = [0, 0, 8], sizes = [2, 8, 8], strides = [1, 1, 1]} : vector<2x8x32xf32> to vector<2x8x8xf32>
    %31 = vector.extract_strided_slice %11 {offsets = [0, 0, 8], sizes = [2, 8, 8], strides = [1, 1, 1]} : vector<2x8x32xf32> to vector<2x8x8xf32>
    %32 = vector.extract_strided_slice %14 {offsets = [0, 0, 8], sizes = [2, 8, 8], strides = [1, 1, 1]} : vector<2x8x32xf32> to vector<2x8x8xf32>
    "tpu.trace_start"() <{level = 10 : i32, message = "bqd,bkd->bqk"}> : () -> ()
    %cst_20 = arith.constant dense<0.000000e+00> : vector<2x8x8xf32>
    %33 = tpu.matmul %30, %31, %cst_20 {dimension_numbers = #tpu.dot_dimension_numbers<[2], [2], [1], [1], [0, 0, 0, 1, 1, 1], [0], [0]>} : vector<2x8x8xf32>, vector<2x8x8xf32>, vector<2x8x8xf32> -> vector<2x8x8xf32>
    "tpu.trace_stop"() : () -> ()
    %cst_21 = arith.constant dense<0xFF800000> : vector<2x8xf32>
    %34 = vector.multi_reduction <maximumf>, %33, %cst_21 [2] : vector<2x8x8xf32> to vector<2x8xf32>
    %35 = vector.shape_cast %34 : vector<2x8xf32> to vector<2x8x1xf32>
    %36 = vector.broadcast %35 : vector<2x8x1xf32> to vector<2x8x8xf32>
    %37 = arith.subf %33, %36 : vector<2x8x8xf32>
    %38 = math.exp %37 : vector<2x8x8xf32>
    %cst_22 = arith.constant dense<0.000000e+00> : vector<2x8xf32>
    %39 = vector.multi_reduction <add>, %38, %cst_22 [2] : vector<2x8x8xf32> to vector<2x8xf32>
    %40 = vector.shape_cast %39 : vector<2x8xf32> to vector<2x8x1xf32>
    %41 = tpu.reciprocal %40 : vector<2x8x1xf32> -> vector<2x8x1xf32>
    %42 = vector.broadcast %41 : vector<2x8x1xf32> to vector<2x8x8xf32>
    %43 = arith.mulf %38, %42 : vector<2x8x8xf32>
    "tpu.trace_start"() <{level = 10 : i32, message = "bqk,bkd->bqd"}> : () -> ()
    %cst_23 = arith.constant dense<0.000000e+00> : vector<2x8x8xf32>
    %44 = tpu.matmul %43, %32, %cst_23 {dimension_numbers = #tpu.dot_dimension_numbers<[2], [1], [1], [2], [0, 0, 0, 1, 1, 2], [0], [0]>} : vector<2x8x8xf32>, vector<2x8x8xf32>, vector<2x8x8xf32> -> vector<2x8x8xf32>
    "tpu.trace_stop"() : () -> ()
    %45 = vector.extract_strided_slice %8 {offsets = [0, 0, 16], sizes = [2, 8, 8], strides = [1, 1, 1]} : vector<2x8x32xf32> to vector<2x8x8xf32>
    %46 = vector.extract_strided_slice %11 {offsets = [0, 0, 16], sizes = [2, 8, 8], strides = [1, 1, 1]} : vector<2x8x32xf32> to vector<2x8x8xf32>
    %47 = vector.extract_strided_slice %14 {offsets = [0, 0, 16], sizes = [2, 8, 8], strides = [1, 1, 1]} : vector<2x8x32xf32> to vector<2x8x8xf32>
    "tpu.trace_start"() <{level = 10 : i32, message = "bqd,bkd->bqk"}> : () -> ()
    %cst_24 = arith.constant dense<0.000000e+00> : vector<2x8x8xf32>
    %48 = tpu.matmul %45, %46, %cst_24 {dimension_numbers = #tpu.dot_dimension_numbers<[2], [2], [1], [1], [0, 0, 0, 1, 1, 1], [0], [0]>} : vector<2x8x8xf32>, vector<2x8x8xf32>, vector<2x8x8xf32> -> vector<2x8x8xf32>
    "tpu.trace_stop"() : () -> ()
    %cst_25 = arith.constant dense<0xFF800000> : vector<2x8xf32>
    %49 = vector.multi_reduction <maximumf>, %48, %cst_25 [2] : vector<2x8x8xf32> to vector<2x8xf32>
    %50 = vector.shape_cast %49 : vector<2x8xf32> to vector<2x8x1xf32>
    %51 = vector.broadcast %50 : vector<2x8x1xf32> to vector<2x8x8xf32>
    %52 = arith.subf %48, %51 : vector<2x8x8xf32>
    %53 = math.exp %52 : vector<2x8x8xf32>
    %cst_26 = arith.constant dense<0.000000e+00> : vector<2x8xf32>
    %54 = vector.multi_reduction <add>, %53, %cst_26 [2] : vector<2x8x8xf32> to vector<2x8xf32>
    %55 = vector.shape_cast %54 : vector<2x8xf32> to vector<2x8x1xf32>
    %56 = tpu.reciprocal %55 : vector<2x8x1xf32> -> vector<2x8x1xf32>
    %57 = vector.broadcast %56 : vector<2x8x1xf32> to vector<2x8x8xf32>
    %58 = arith.mulf %53, %57 : vector<2x8x8xf32>
    "tpu.trace_start"() <{level = 10 : i32, message = "bqk,bkd->bqd"}> : () -> ()
    %cst_27 = arith.constant dense<0.000000e+00> : vector<2x8x8xf32>
    %59 = tpu.matmul %58, %47, %cst_27 {dimension_numbers = #tpu.dot_dimension_numbers<[2], [1], [1], [2], [0, 0, 0, 1, 1, 2], [0], [0]>} : vector<2x8x8xf32>, vector<2x8x8xf32>, vector<2x8x8xf32> -> vector<2x8x8xf32>
    "tpu.trace_stop"() : () -> ()
    %60 = vector.extract_strided_slice %8 {offsets = [0, 0, 24], sizes = [2, 8, 8], strides = [1, 1, 1]} : vector<2x8x32xf32> to vector<2x8x8xf32>
    %61 = vector.extract_strided_slice %11 {offsets = [0, 0, 24], sizes = [2, 8, 8], strides = [1, 1, 1]} : vector<2x8x32xf32> to vector<2x8x8xf32>
    %62 = vector.extract_strided_slice %14 {offsets = [0, 0, 24], sizes = [2, 8, 8], strides = [1, 1, 1]} : vector<2x8x32xf32> to vector<2x8x8xf32>
    "tpu.trace_start"() <{level = 10 : i32, message = "bqd,bkd->bqk"}> : () -> ()
    %cst_28 = arith.constant dense<0.000000e+00> : vector<2x8x8xf32>
    %63 = tpu.matmul %60, %61, %cst_28 {dimension_numbers = #tpu.dot_dimension_numbers<[2], [2], [1], [1], [0, 0, 0, 1, 1, 1], [0], [0]>} : vector<2x8x8xf32>, vector<2x8x8xf32>, vector<2x8x8xf32> -> vector<2x8x8xf32>
    "tpu.trace_stop"() : () -> ()
    %cst_29 = arith.constant dense<0xFF800000> : vector<2x8xf32>
    %64 = vector.multi_reduction <maximumf>, %63, %cst_29 [2] : vector<2x8x8xf32> to vector<2x8xf32>
    %65 = vector.shape_cast %64 : vector<2x8xf32> to vector<2x8x1xf32>
    %66 = vector.broadcast %65 : vector<2x8x1xf32> to vector<2x8x8xf32>
    %67 = arith.subf %63, %66 : vector<2x8x8xf32>
    %68 = math.exp %67 : vector<2x8x8xf32>
    %cst_30 = arith.constant dense<0.000000e+00> : vector<2x8xf32>
    %69 = vector.multi_reduction <add>, %68, %cst_30 [2] : vector<2x8x8xf32> to vector<2x8xf32>
    %70 = vector.shape_cast %69 : vector<2x8xf32> to vector<2x8x1xf32>
    %71 = tpu.reciprocal %70 : vector<2x8x1xf32> -> vector<2x8x1xf32>
    %72 = vector.broadcast %71 : vector<2x8x1xf32> to vector<2x8x8xf32>
    %73 = arith.mulf %68, %72 : vector<2x8x8xf32>
    "tpu.trace_start"() <{level = 10 : i32, message = "bqk,bkd->bqd"}> : () -> ()
    %cst_31 = arith.constant dense<0.000000e+00> : vector<2x8x8xf32>
    %74 = tpu.matmul %73, %62, %cst_31 {dimension_numbers = #tpu.dot_dimension_numbers<[2], [1], [1], [2], [0, 0, 0, 1, 1, 2], [0], [0]>} : vector<2x8x8xf32>, vector<2x8x8xf32>, vector<2x8x8xf32> -> vector<2x8x8xf32>
    "tpu.trace_stop"() : () -> ()
    %75 = tpu.concatenate %29, %44, %59, %74 in 2 : vector<2x8x8xf32>, vector<2x8x8xf32>, vector<2x8x8xf32>, vector<2x8x8xf32> -> vector<2x8x32xf32>
    %76 = vector.shape_cast %75 : vector<2x8x32xf32> to vector<16x32xf32>
    %c0_32 = arith.constant 0 : index
    %c0_33 = arith.constant 0 : index
    %77 = vector.load %arg6[%c0_32, %c0_33] : memref<32x32xf32, #tpu.memory_space<vmem>>, vector<32x32xf32>
    %cst_34 = arith.constant dense<0.000000e+00> : vector<16x32xf32>
    %78 = tpu.matmul %76, %77, %cst_34 {dimension_numbers = #tpu.dot_dimension_numbers<[1], [0], [0], [1], [0, 0, 1, 1], [], []>} : vector<16x32xf32>, vector<32x32xf32>, vector<16x32xf32> -> vector<16x32xf32>
    %79 = vector.shape_cast %78 : vector<16x32xf32> to vector<2x8x32xf32>
    %80 = arith.addf %0, %79 : vector<2x8x32xf32>
    %cst_35 = arith.constant dense<0.000000e+00> : vector<2x8xf32>
    %81 = vector.multi_reduction <add>, %80, %cst_35 [2] : vector<2x8x32xf32> to vector<2x8xf32>
    %82 = vector.shape_cast %81 : vector<2x8xf32> to vector<2x8x1xf32>
    %cst_36 = arith.constant 3.200000e+01 : f32
    %83 = vector.broadcast %cst_36 : f32 to vector<2x8x1xf32>
    %84 = arith.divf %82, %83 : vector<2x8x1xf32>
    %85 = vector.broadcast %84 : vector<2x8x1xf32> to vector<2x8x32xf32>
    %86 = arith.subf %80, %85 : vector<2x8x32xf32>
    %87 = arith.mulf %86, %86 : vector<2x8x32xf32>
    %cst_37 = arith.constant dense<0.000000e+00> : vector<2x8xf32>
    %88 = vector.multi_reduction <add>, %87, %cst_37 [2] : vector<2x8x32xf32> to vector<2x8xf32>
    %89 = vector.shape_cast %88 : vector<2x8xf32> to vector<2x8x1xf32>
    %cst_38 = arith.constant 3.200000e+01 : f32
    %90 = vector.broadcast %cst_38 : f32 to vector<2x8x1xf32>
    %91 = arith.divf %89, %90 : vector<2x8x1xf32>
    %92 = vector.broadcast %84 : vector<2x8x1xf32> to vector<2x8x32xf32>
    %93 = arith.subf %80, %92 : vector<2x8x32xf32>
    %cst_39 = arith.constant 9.99999974E-6 : f32
    %94 = vector.broadcast %cst_39 : f32 to vector<2x8x1xf32>
    %95 = arith.addf %91, %94 : vector<2x8x1xf32>
    %96 = math.rsqrt %95 : vector<2x8x1xf32>
    %97 = vector.broadcast %96 : vector<2x8x1xf32> to vector<2x8x32xf32>
    %98 = arith.mulf %93, %97 : vector<2x8x32xf32>
    %c0_40 = arith.constant 0 : index
    %c0_41 = arith.constant 0 : index
    %c0_42 = arith.constant 0 : index
    %99 = vector.load %arg7[%c0_40, %c0_41, %c0_42] : memref<1x1x32xf32, #tpu.memory_space<vmem>>, vector<1x1x32xf32>
    %100 = vector.broadcast %99 : vector<1x1x32xf32> to vector<2x8x32xf32>
    %101 = arith.mulf %98, %100 : vector<2x8x32xf32>
    %c0_43 = arith.constant 0 : index
    %c0_44 = arith.constant 0 : index
    %c0_45 = arith.constant 0 : index
    %102 = vector.load %arg8[%c0_43, %c0_44, %c0_45] : memref<1x1x32xf32, #tpu.memory_space<vmem>>, vector<1x1x32xf32>
    %103 = vector.broadcast %102 : vector<1x1x32xf32> to vector<2x8x32xf32>
    %104 = arith.addf %101, %103 : vector<2x8x32xf32>
    %105 = vector.extract_strided_slice %104 {offsets = [0, 0, 0], sizes = [2, 1, 32], strides = [1, 1, 1]} : vector<2x8x32xf32> to vector<2x1x32xf32>
    %106 = vector.shape_cast %105 : vector<2x1x32xf32> to vector<2x32xf32>
    %107 = vector.extract_strided_slice %104 {offsets = [0, 1, 0], sizes = [2, 1, 32], strides = [1, 1, 1]} : vector<2x8x32xf32> to vector<2x1x32xf32>
    %108 = vector.shape_cast %107 : vector<2x1x32xf32> to vector<2x32xf32>
    %109 = vector.extract_strided_slice %104 {offsets = [0, 2, 0], sizes = [2, 1, 32], strides = [1, 1, 1]} : vector<2x8x32xf32> to vector<2x1x32xf32>
    %110 = vector.shape_cast %109 : vector<2x1x32xf32> to vector<2x32xf32>
    %111 = vector.extract_strided_slice %104 {offsets = [0, 3, 0], sizes = [2, 1, 32], strides = [1, 1, 1]} : vector<2x8x32xf32> to vector<2x1x32xf32>
    %112 = vector.shape_cast %111 : vector<2x1x32xf32> to vector<2x32xf32>
    %113 = vector.extract_strided_slice %104 {offsets = [0, 4, 0], sizes = [2, 1, 32], strides = [1, 1, 1]} : vector<2x8x32xf32> to vector<2x1x32xf32>
    %114 = vector.shape_cast %113 : vector<2x1x32xf32> to vector<2x32xf32>
    %115 = vector.extract_strided_slice %104 {offsets = [0, 5, 0], sizes = [2, 1, 32], strides = [1, 1, 1]} : vector<2x8x32xf32> to vector<2x1x32xf32>
    %116 = vector.shape_cast %115 : vector<2x1x32xf32> to vector<2x32xf32>
    %117 = vector.extract_strided_slice %104 {offsets = [0, 6, 0], sizes = [2, 1, 32], strides = [1, 1, 1]} : vector<2x8x32xf32> to vector<2x1x32xf32>
    %118 = vector.shape_cast %117 : vector<2x1x32xf32> to vector<2x32xf32>
    %119 = vector.extract_strided_slice %104 {offsets = [0, 7, 0], sizes = [2, 1, 32], strides = [1, 1, 1]} : vector<2x8x32xf32> to vector<2x1x32xf32>
    %120 = vector.shape_cast %119 : vector<2x1x32xf32> to vector<2x32xf32>
    %121 = tpu.concatenate %106, %108, %110, %112, %114, %116, %118, %120 in 1 : vector<2x32xf32>, vector<2x32xf32>, vector<2x32xf32>, vector<2x32xf32>, vector<2x32xf32>, vector<2x32xf32>, vector<2x32xf32>, vector<2x32xf32> -> vector<2x256xf32>
    %c0_46 = arith.constant 0 : index
    %c0_47 = arith.constant 0 : index
    %122 = vector.load %arg9[%c0_46, %c0_47] : memref<256x128xf32, #tpu.memory_space<vmem>>, vector<256x128xf32>
    %cst_48 = arith.constant dense<0.000000e+00> : vector<2x128xf32>
    %123 = tpu.matmul %121, %122, %cst_48 {dimension_numbers = #tpu.dot_dimension_numbers<[1], [0], [0], [1], [0, 0, 1, 1], [], []>} : vector<2x256xf32>, vector<256x128xf32>, vector<2x128xf32> -> vector<2x128xf32>
    %c0_49 = arith.constant 0 : index
    %c0_50 = arith.constant 0 : index
    %124 = vector.load %arg10[%c0_49, %c0_50] : memref<2x128xf32, #tpu.memory_space<vmem>>, vector<2x128xf32>
    tpu.vector_store %arg10[%c0_49, %c0_50], %123 {strides = array<i32>} : memref<2x128xf32, #tpu.memory_space<vmem>>, vector<2x128xf32>,
    return
  }
}

</mosaic_0001>

<bundles_post_ra>
// kernel: tpu_custom_call.1
= control target key start
LH: loop header
LB: loop body
LE: loop exit
PB: predicated region body
PF: predicated region fallthrough
CT: control target
= control target key end

     0   :  { %15 = vsyncpa [#allocation3], 0  ;;  %s1787_s0 = inlined_call_operand.hbm [shape: f32[2,8,32], index: 0, kind: input, shape index: {}]   ;;  %s1788_s1 = inlined_call_operand.hbm [shape: f32[2,8,32], index: 1, kind: input, shape index: {}]   ;;  %s1789_s2 = inlined_call_operand.hbm [shape: f32[2,8,32], index: 2, kind: input, shape index: {}]   ;;  %s1790_s3 = inlined_call_operand.hbm [shape: f32[32,32], index: 3, kind: input, shape index: {}]   ;;  %s1791_s4 = inlined_call_operand.hbm [shape: f32[32,32], index: 4, kind: input, shape index: {}]   ;;  %s1792_s5 = inlined_call_operand.hbm [shape: f32[32,32], index: 5, kind: input, shape index: {}]   ;;  %s1793_s6 = inlined_call_operand.hbm [shape: f32[32,32], index: 6, kind: input, shape index: {}]   ;;  %s1794_s7 = inlined_call_operand.vmem [shape: f32[1,1,32], index: 7, kind: input, shape index: {}]   ;;  %s1795_s8 = inlined_call_operand.vmem [shape: f32[1,1,32], index: 8, kind: input, shape index: {}]   ;;  %s1796_s9 = inlined_call_operand.hbm [shape: f32[256,128], index: 9, kind: input, shape index: {}]   ;;  %s1797_s10 = inlined_call_operand.hbm [shape: f32[2,128], index: 10, kind: output, shape index: {}]  }
   0x1   :  { %16 = vsyncpa [#allocation6], 0 }
   0x2   :  { %17 = vsyncpa [#allocation9], 0 }
   0x3   :  { %18 = vsyncpa [#allocation12], 0 }
   0x4   :  { %19 = vsyncpa [#allocation15], 0 }
   0x5   :  { %20 = vsyncpa [#allocation4], 0  ;;  %s38_s15 = sshll.u32 %s1788_s1, 4  ;;  %s1500_s16 = smov [#allocation5]   ;;  %s39_s15 = int_to_ptr.hbm [resolvable:$true] %s38_s15 }
   0x6   :  { %s40_s17 = sshll.u32 %s1500_s16, 4  ;;  %s64_s20 = sshll.u32 %s1790_s3, 4  ;;  %s41_s17 = int_to_ptr.vmem [resolvable:$true] %s40_s17  ;;  %s65_s20 = int_to_ptr.hbm [resolvable:$true] %s64_s20 }
   0x7   :  { %s1501_s21 = smov 128   ;;  %s1502_s22 = smov 8  }
   0x8   :  { %46 = dma.hbm_to_vmem [thread:$0]  %s39_s15, 256, %s41_s17, [#allocation6], %s1501_s21, %s1501_s21, %s1502_s22  }
   0x9   :  { %s1503_s23 = smov [#allocation8]   ;;  %s90_s1 = sshll.u32 %s1792_s5, 4  ;;  %s91_s1 = int_to_ptr.hbm [resolvable:$true] %s90_s1 }
   0xa   :  { %s66_s24 = sshll.u32 %s1503_s23, 4  ;;  %s25_s28 = sshll.u32 %s1787_s0, 4  ;;  %s67_s24 = int_to_ptr.vmem [resolvable:$true] %s66_s24  ;;  %s26_s28 = int_to_ptr.hbm [resolvable:$true] %s25_s28 }
   0xb   :  { %72 = dma.hbm_to_vmem [thread:$0]  %s65_s20, 512, %s67_s24, [#allocation9], %s1501_s21, %s1501_s21, %s1502_s22  }
   0xc   :  { %s1504_s29 = smov [#allocation11]   ;;  %s1505_s11 = smov [#allocation2]  }
   0xd   :  { %s92_s30 = sshll.u32 %s1504_s29, 4  ;;  %s27_s5 = sshll.u32 %s1505_s11, 4  ;;  %s93_s30 = int_to_ptr.vmem [resolvable:$true] %s92_s30  ;;  %s28_s5 = int_to_ptr.vmem [resolvable:$true] %s27_s5 }
   0xe   :  { %98 = dma.hbm_to_vmem [thread:$0]  %s91_s1, 512, %s93_s30, [#allocation12], %s1501_s21, %s1501_s21, %s1502_s22  }
   0xf   :  { %s51_s14 = sshll.u32 %s1789_s2, 4  ;;  %s77_s16 = sshll.u32 %s1791_s4, 4  ;;  %s52_s14 = int_to_ptr.hbm [resolvable:$true] %s51_s14  ;;  %s78_s16 = int_to_ptr.hbm [resolvable:$true] %s77_s16 }
  0x10   :  { %33 = dma.hbm_to_vmem [thread:$0]  %s26_s28, 256, %s28_s5, [#allocation3], %s1501_s21, %s1501_s21, %s1502_s22  }
  0x11   :  { %s1506_s17 = smov [#allocation7]   ;;  %s1507_s19 = smov [#allocation10]  }
  0x12   :  { %s53_s18 = sshll.u32 %s1506_s17, 4  ;;  %s79_s2 = sshll.u32 %s1507_s19, 4  ;;  %s54_s18 = int_to_ptr.vmem [resolvable:$true] %s53_s18  ;;  %s80_s2 = int_to_ptr.vmem [resolvable:$true] %s79_s2 }
  0x13   :  { %59 = dma.hbm_to_vmem [thread:$0]  %s52_s14, 256, %s54_s18, [#allocation6], %s1501_s21, %s1501_s21, %s1502_s22  }
  0x14   :  { %s103_s24 = sshll.u32 %s1793_s6, 4  ;;  %s120_s26 = sshll.u32 %s1796_s9, 4  ;;  %s104_s24 = int_to_ptr.hbm [resolvable:$true] %s103_s24  ;;  %s121_s26 = int_to_ptr.hbm [resolvable:$true] %s120_s26 }
  0x15   :  { %85 = dma.hbm_to_vmem [thread:$0]  %s78_s16, 512, %s80_s2, [#allocation9], %s1501_s21, %s1501_s21, %s1502_s22  }
  0x16   :  { %s1508_s1 = smov [#allocation13]   ;;  %s1509_s27 = smov [#allocation14]  }
  0x17   :  { %s105_s3 = sshll.u32 %s1508_s1, 4  ;;  %s122_s6 = sshll.u32 %s1509_s27, 4  ;;  %s106_s3 = int_to_ptr.vmem [resolvable:$true] %s105_s3  ;;  %s123_s6 = int_to_ptr.vmem [resolvable:$true] %s122_s6 }
  0x18   :  { %111 = dma.hbm_to_vmem [thread:$0]  %s104_s24, 512, %s106_s3, [#allocation12], %s1501_s21, %s1501_s21, %s1502_s22  }
  0x19   :  { %128 = dma.hbm_to_vmem [thread:$0]  %s121_s26, 4096, %s123_s6, [#allocation15], %s1501_s21, %s1501_s21, %s1502_s22  }
  0x1a   :  { %1488 = dma.done.wait [#allocation3], 256  }
  0x1b   :  { %1489 = vsyncadd [#allocation3], 4294967040 }
  0x1c   :  { %1490 = dma.done.wait [#allocation6], 512  }
  0x1d   :  { %1491 = vsyncadd [#allocation6], 4294966784 }
  0x1e   :  { %1492 = dma.done.wait [#allocation9], 1024  }
  0x1f   :  { %1493 = vsyncadd [#allocation9], 4294966272 }
  0x20   :  { %1494 = dma.done.wait [#allocation12], 1024  }
  0x21   :  { %1495 = vsyncadd [#allocation12], 4294966272 }
  0x22   :  { %1496 = dma.done.wait [#allocation15], 4096  }
  0x23   :  { %1497 = vsyncadd [#allocation15], 4294963200  ;;  %v170_v0 = vld [vmem:[#allocation8 + $0x18] sm:$0xff]  ;;  %v169_v2 = vld [vmem:[#allocation8 + $0x10] sm:$0xff]  ;;  %vm171_vm0 = vcmask 261120   ;;  %vm267_vm1 = vcmask 64512  }
  0x24   :  { %v204_v1 = vld [vmem:[#allocation10 + $0x18] sm:$0xff]  ;;  %190 = vmatpush.msra.mxu0 %v170_v0  ;;  %v203_v3 = vld [vmem:[#allocation10 + $0x10] sm:$0xff]  ;;  %v168_v4 = vld [vmem:[#allocation8 + $0x8] sm:$0xff]  ;;  %s1510_s9 = smov 112   ;;  %s1511_s21 = smov 120  }
  0x25   :  { %223 = vmatpush.msra.mxu1 %v204_v1  ;;  %v202_v5 = vld [vmem:[#allocation10 + $0x8] sm:$0xff]  ;;  %v167_v6 = vld [vmem:[#allocation8] sm:$0xff]  ;;  %v1623_v8 = vld [vmem:[#allocation2] sm:$0xff]  ;;  %s1512_s28 = smov 104   ;;  %s1513_s29 = smov 16  }
  0x26   :  { %191 = vmatpush.msra.mxu0 %v169_v2  ;;  %v201_v7 = vld [vmem:[#allocation10] sm:$0xff]  ;;  %v237_v10 = vld [vmem:[#allocation11 + $0x18] sm:$0xff]  ;;  %v236_v11 = vld [vmem:[#allocation11 + $0x10] sm:$0xff]  ;;  %s1514_s30 = smov 24   ;;  %s1518_s13 = smov 32  }
  0x27   :  { %224 = vmatpush.msra.mxu1 %v203_v3  ;;  %v163_v9 = vld [vmem:[#allocation5] sm:$0xff]  ;;  %1193 = vmatpush.msra.mxu2 %v237_v10  ;;  %v235_v12 = vld [vmem:[#allocation11 + $0x8] sm:$0xff]  ;;  %v1628_v14 = vld [vmem:[#allocation2 + $0x8] sm:$0xff]  ;;  %s1519_s14 = smov [#allocation16]   ;;  %s1147_s17 = sshll.u32 %s1797_s10, 4  ;;  %s1148_s17 = int_to_ptr.hbm [resolvable:$true] %s1147_s17 }
  0x28   :  { %192 = vmatpush.msra.mxu0 %v168_v4  ;;  %v234_v13 = vld [vmem:[#allocation11] sm:$0xff]  ;;  %v164_v15 = vld [vmem:[#allocation5 + $0x8] sm:$0xff]  ;;  %v165_v16 = vld [vmem:[#allocation7] sm:$0xff]  ;;  %s1145_s0 = sshll.u32 %s1519_s14, 4  ;;  %s1146_s0 = int_to_ptr.vmem [resolvable:$true] %s1145_s0 }
  0x29   :  { %225 = vmatpush.msra.mxu1 %v202_v5  ;;  %1194 = vmatpush.msra.mxu2 %v236_v11  ;;  %v166_v21 = vld [vmem:[#allocation7 + $0x8] sm:$0xff] }
  0x2a   :  { %193 = vmatpush.msra.mxu0 %v167_v6 }
  0x2b   :  { %226 = vmatpush.msra.mxu1 %v201_v7  ;;  %1161 = vmatmul.msk.f32.vlgmr.msra.gmra.mxu0 %vm171_vm0, %v1623_v8 }
  0x2c   :  { %1163 = vmatmul.msk.f32.vlgmr.msra.gmra.mxu1 %vm171_vm0, %v163_v9  ;;  %256 = vmatpush.msrb.mxu0 %v237_v10 }
  0x2d   :  { %1195 = vmatpush.msra.mxu2 %v235_v12 }
  0x2e   :  { %257 = vmatpush.msrb.mxu0 %v236_v11 }
  0x2f   :  { %1196 = vmatpush.msra.mxu2 %v234_v13 }
  0x30   :  { %258 = vmatpush.msrb.mxu0 %v235_v12  ;;  %1166 = vmatmul.msk.f32.vlgmr.msra.gmra.mxu2 %vm171_vm0, %v166_v21 }
  0x32   :  { %259 = vmatpush.msrb.mxu0 %v234_v13 }
  0x33   :  { %1162 = vmatmul.msk.f32.gmra.mxu0 %vm171_vm0, %v1628_v14 }
  0x34   :  { %1164 = vmatmul.msk.f32.gmra.mxu1 %vm171_vm0, %v164_v15 }
  0x3b   :  { %1165 = vmatmul.msk.f32.vlgmr.msrb.gmra.mxu0 %vm171_vm0, %v165_v16 }
  0xa8   :  { %v195_v17 = vpop.f32.mrf.mxu0 }
  0xa9   :  { %v228_v18 = vpop.f32.mrf.mxu1  ;;  %572 = vrot.lane.b32.xlu2 %v195_v17, %s1510_s9 }
  0xaa   :  { %574 = vrot.lane.b32.xlu1 %v228_v18, %s1510_s9  ;;  %416 = vrot.lane.b32.xlu0 %v228_v18, %s1511_s21 }
  0xab   :  { %1167 = vmatpush.xpose.msk.msra.mxu0 %vm267_vm1, %v228_v18 }
  0xae   :  { %1168 = vmatmul.msk.f32.vlgmr.msra.gmra.mxu0 %vm267_vm1, %v195_v17 }
  0xb0   :  { %v198_v19 = vpop.f32.mrf.mxu0 }
  0xb1   :  { %v231_v20 = vpop.f32.mrf.mxu1  ;;  %442 = vrot.lane.b32.xlu2 %v198_v19, %s1511_s21 }
  0xb2   :  { %444 = vrot.lane.b32.xlu1 %v231_v20, %s1511_s21  ;;  %1169 = vmatpush.xpose.msk.msrb.mxu1 %vm267_vm1, %v231_v20 }
  0xb3   :  { %414 = vrot.lane.b32.xlu0 %v195_v17, %s1511_s21  ;;  %v1668_v39 = vpop.f32.mrf.mxu2 }
  0xb4   :  { %409 = vmatpush.msrb.mxu0 %v1668_v39 }
  0xb5   :  { %1170 = vmatmul.msk.f32.vlgmr.msrb.gmra.mxu1 %vm267_vm1, %v198_v19 }
  0xb8   :  { %v1650_v22 = vpop.f32.mrf.mxu0 }
  0xb9   :  { %600 = vrot.lane.b32.xlu2 %v198_v19, %s1510_s9  ;;  %386 = vmatpush.msra.mxu3 %v1650_v22 }
  0xba   :  { %730 = vrot.lane.b32.xlu1 %v228_v18, %s1512_s28 }
  0xbb   :  { %602 = vrot.lane.b32.xlu0 %v231_v20, %s1510_s9 }
  0xc1   :  { %756 = vrot.lane.b32.xlu2 %v198_v19, %s1512_s28 }
  0xc2   :  { %758 = vrot.lane.b32.xlu1 %v231_v20, %s1512_s28 }
  0xc3   :  { %728 = vrot.lane.b32.xlu0 %v195_v17, %s1512_s28 }
 0x103   :  { %v573_v23 = vpop.permute.xlu2 %572 }
 0x10b   :  { %v443_v26 = vpop.permute.xlu2 %442 }
 0x113   :  { %v601_v33 = vpop.permute.xlu2 %600 }
 0x11b   :  { %v757_v38 = vpop.permute.xlu2 %756 }
 0x11c   :  { %v575_v24 = vpop.permute.xlu1 %574  ;;  %v417_v25 = vpop.permute.xlu0 %416 }
 0x11d   :  { %1173 = vmatpush.xpose.msk.msra.mxu1 %vm267_vm1, %v417_v25 }
 0x121   :  { %1179 = vmatpush.xpose.msk.msrb.mxu1 %vm267_vm1, %v575_v24 }
 0x124   :  { %v445_v27 = vpop.permute.xlu1 %444 }
 0x125   :  { %v415_v28 = vpop.permute.xlu0 %414  ;;  %1175 = vmatpush.xpose.msk.msrb.mxu2 %vm267_vm1, %v445_v27 }
 0x126   :  { %1174 = vmatmul.msk.f32.vlgmr.msra.gmra.mxu1 %vm267_vm1, %v415_v28 }
 0x128   :  { %1176 = vmatmul.msk.f32.vlgmr.msrb.gmra.mxu2 %vm267_vm1, %v443_v26 }
 0x12b   :  { %v291_v29 = vpop.f32.mrf.mxu0 }
 0x12c   :  { %v731_v30 = vpop.permute.xlu1 %730  ;;  %v320_v31 = vsel %vm267_vm1, %v291_v29, -inf }
 0x12d   :  { %v603_v32 = vpop.permute.xlu0 %602  ;;  %321 = vmax.xlane.f32.xlu0 %v320_v31  ;;  %1185 = vmatpush.xpose.msk.msra.mxu1 %vm267_vm1, %v731_v30 }
 0x12e   :  { %1180 = vmatmul.msk.f32.vlgmr.msrb.gmra.mxu1 %vm267_vm1, %v573_v23  ;;  %1181 = vmatpush.xpose.msk.msra.mxu2 %vm267_vm1, %v603_v32 }
 0x131   :  { %1182 = vmatmul.msk.f32.vlgmr.msra.gmra.mxu2 %vm267_vm1, %v601_v33 }
 0x132   :  { %v317_v34 = vpop.f32.mrf.mxu1 }
 0x133   :  { %v323_v35 = vsel %vm267_vm1, %v317_v34, -inf }
 0x134   :  { %v759_v36 = vpop.permute.xlu1 %758  ;;  %324 = vmax.xlane.f32.xlu2 %v323_v35 }
 0x135   :  { %v729_v37 = vpop.permute.xlu0 %728  ;;  %1187 = vmatpush.xpose.msk.msrb.mxu2 %vm267_vm1, %v759_v36 }
 0x136   :  { %1186 = vmatmul.msk.f32.vlgmr.msra.gmra.mxu1 %vm267_vm1, %v729_v37 }
 0x139   :  { %1188 = vmatmul.msk.f32.vlgmr.msrb.gmra.mxu2 %vm267_vm1, %v757_v38 }
 0x1a0   :  { %v322_v40 = vpop.xlane.xlu0 %321 }
 0x1a1   :  { %v326_v41 = vsub.f32 %v291_v29, %v322_v40 }
 0x1a3   :  { %v328_v42 = vmul.f32 1.442695, %v326_v41  ;;  %v439_v43 = vpop.f32.mrf.mxu1 }
 0x1a4   :  { %v470_v44 = vsel %vm267_vm1, %v439_v43, -inf }
 0x1a5   :  { %1234 = vpow2.f32 %v328_v42  ;;  %471 = vmax.xlane.f32.xlu1 %v470_v44 }
 0x1a7   :  { %v325_v45 = vpop.xlane.xlu2 %324 }
 0x1a8   :  { %v327_v46 = vsub.f32 %v317_v34, %v325_v45 }
 0x1aa   :  { %v330_v47 = vmul.f32 1.442695, %v327_v46 }
 0x1ab   :  { %v1672_v48 = vpop.eup %1234  ;;  %v597_v49 = vpop.f32.mrf.mxu1 }
 0x1ac   :  { %v467_v50 = vpop.f32.mrf.mxu2  ;;  %1236 = vpow2.f32 %v330_v47  ;;  %v628_v51 = vsel %vm267_vm1, %v597_v49, -inf  ;;  %v332_v52 = vsel %vm267_vm1, %v1672_v48, 0.0 }
 0x1ad   :  { %v473_v53 = vsel %vm267_vm1, %v467_v50, -inf  ;;  %629 = vmax.xlane.f32.xlu2 %v628_v51  ;;  %333 = vadd.xlane.f32.xlu1 %v332_v52 }
 0x1ae   :  { %474 = vmax.xlane.f32.xlu0 %v473_v53 }
 0x1b2   :  { %v1678_v54 = vpop.eup %1236 }
 0x1b3   :  { %v753_v55 = vpop.f32.mrf.mxu1  ;;  %v335_v56 = vsel %vm267_vm1, %v1678_v54, 0.0 }
 0x1b4   :  { %v625_v57 = vpop.f32.mrf.mxu2  ;;  %v784_v58 = vsel %vm267_vm1, %v753_v55, -inf }
 0x1b5   :  { %785 = vmax.xlane.f32.xlu1 %v784_v58  ;;  %v631_v59 = vsel %vm267_vm1, %v625_v57, -inf }
 0x1b6   :  { %632 = vmax.xlane.f32.xlu2 %v631_v59  ;;  %336 = vadd.xlane.f32.xlu0 %v335_v56 }
 0x1bc   :  { %v781_v60 = vpop.f32.mrf.mxu2 }
 0x1bd   :  { %v787_v61 = vsel %vm267_vm1, %v781_v60, -inf }
 0x1be   :  { %788 = vmax.xlane.f32.xlu0 %v787_v61 }
 0x1ce   :  { %519 = vrot.lane.b32.xlu1 %v1650_v22, %s1511_s21 }
 0x1d2   :  { %676 = vrot.lane.b32.xlu0 %v1650_v22, %s1510_s9 }
 0x218   :  { %v472_v62 = vpop.xlane.xlu1 %471 }
 0x219   :  { %v476_v63 = vsub.f32 %v439_v43, %v472_v62 }
 0x21b   :  { %v478_v0 = vmul.f32 1.442695, %v476_v63 }
 0x21d   :  { %1238 = vpow2.f32 %v478_v0 }
 0x220   :  { %v630_v1 = vpop.xlane.xlu2 %629  ;;  %v334_v2 = vpop.xlane.xlu1 %333 }
 0x221   :  { %v634_v3 = vsub.f32 %v597_v49, %v630_v1  ;;  %1240 = vrcp.f32 %v334_v2  ;;  %v475_v4 = vpop.xlane.xlu0 %474  ;;  %v349_v21 = vand.u32 2147483648, %v334_v2  ;;  %v347_v24 = vand.u32 2147483647, %v334_v2 }
 0x222   :  { %v477_v5 = vsub.f32 %v467_v50, %v475_v4  ;;  %vm343_vm3 = vweird.f32 %v334_v2 }
 0x223   :  { %v1689_v6 = vpop.eup %1238  ;;  %v636_v7 = vmul.f32 1.442695, %v634_v3  ;;  %v350_v31 = vor.u32 1.1754944e-38, %v349_v21  ;;  %vm348_vm5 = vcmp.eq.f32.partialorder %v347_v24, 8.507059e+37 }
 0x224   :  { %v480_v9 = vmul.f32 1.442695, %v477_v5  ;;  %v482_v10 = vsel %vm267_vm1, %v1689_v6, 0.0 }
 0x225   :  { %1242 = vpow2.f32 %v636_v7  ;;  %483 = vadd.xlane.f32.xlu2 %v482_v10 }
 0x226   :  { %1244 = vpow2.f32 %v480_v9 }
 0x227   :  { %v1241_v11 = vpop.eup %1240 }
 0x228   :  { %v339_v12 = vmul.f32 %v1241_v11, %v334_v2  ;;  %v786_v13 = vpop.xlane.xlu1 %785  ;;  %vm344_vm2 = vweird.f32 %v1241_v11 }
 0x229   :  { %v790_v15 = vsub.f32 %v753_v55, %v786_v13  ;;  %v633_v16 = vpop.xlane.xlu2 %632  ;;  %v337_v17 = vpop.xlane.xlu0 %336  ;;  %vm345_vm4 = vmor %vm343_vm3, %vm344_vm2 }
 0x22a   :  { %v340_v18 = vsub.f32 1.0, %v339_v12  ;;  %v635_v19 = vsub.f32 %v625_v57, %v633_v16  ;;  %1246 = vrcp.f32 %v337_v17  ;;  %v363_v43 = vand.u32 2147483648, %v337_v17 }
 0x22b   :  { %v1693_v20 = vpop.eup %1242  ;;  %v792_v23 = vmul.f32 1.442695, %v790_v15  ;;  %v361_v47 = vand.u32 2147483647, %v337_v17  ;;  %vm357_vm7 = vweird.f32 %v337_v17 }
 0x22c   :  { %v1695_v25 = vpop.eup %1244  ;;  %v341_v26 = vmul.f32 %v1241_v11, %v340_v18  ;;  %v638_v27 = vmul.f32 1.442695, %v635_v19  ;;  %v640_v28 = vsel %vm267_vm1, %v1693_v20, 0.0  ;;  %v364_v50 = vor.u32 1.1754944e-38, %v363_v43 }
 0x22d   :  { %1248 = vpow2.f32 %v792_v23  ;;  %641 = vadd.xlane.f32.xlu1 %v640_v28  ;;  %v485_v29 = vsel %vm267_vm1, %v1695_v25, 0.0  ;;  %vm362_vm9 = vcmp.eq.f32.partialorder %v361_v47, 8.507059e+37 }
 0x22e   :  { %1250 = vpow2.f32 %v638_v27  ;;  %486 = vadd.xlane.f32.xlu2 %v485_v29  ;;  %v342_v30 = vadd.f32 %v1241_v11, %v341_v26 }
 0x230   :  { %v1247_v32 = vpop.eup %1246  ;;  %v346_v33 = vsel %vm345_vm4, %v1241_v11, %v342_v30 }
 0x231   :  { %v353_v34 = vmul.f32 %v1247_v32, %v337_v17  ;;  %v789_v35 = vpop.xlane.xlu0 %788  ;;  %v351_v36 = vsel %vm348_vm5, %v350_v31, %v346_v33  ;;  %vm358_vm6 = vweird.f32 %v1247_v32 }
 0x232   :  { %v791_v37 = vsub.f32 %v781_v60, %v789_v35  ;;  %v366_v38 = vmul.f32 %v1672_v48, %v351_v36  ;;  %vm359_vm8 = vmor %vm357_vm7, %vm358_vm6 }
 0x233   :  { %v1702_v40 = vpop.eup %1248  ;;  %v354_v41 = vsub.f32 1.0, %v353_v34 }
 0x234   :  { %v1704_v42 = vpop.eup %1250  ;;  %v794_v44 = vmul.f32 1.442695, %v791_v37  ;;  %1171 = vmatmul.msk.f32.vlgmr.msra.gmra.mxu3 %vm267_vm1, %v366_v38  ;;  %v796_v45 = vsel %vm267_vm1, %v1702_v40, 0.0 }
 0x235   :  { %v355_v46 = vmul.f32 %v1247_v32, %v354_v41  ;;  %797 = vadd.xlane.f32.xlu0 %v796_v45  ;;  %v643_v49 = vsel %vm267_vm1, %v1704_v42, 0.0 }
 0x236   :  { %1252 = vpow2.f32 %v794_v44  ;;  %644 = vadd.xlane.f32.xlu2 %v643_v49 }
 0x237   :  { %v356_v48 = vadd.f32 %v1247_v32, %v355_v46 }
 0x239   :  { %v360_v51 = vsel %vm359_vm8, %v1247_v32, %v356_v48 }
 0x23a   :  { %v365_v52 = vsel %vm362_vm9, %v364_v50, %v360_v51 }
 0x23b   :  { %v367_v53 = vmul.f32 %v1678_v54, %v365_v52 }
 0x23c   :  { %v1712_v55 = vpop.eup %1252 }
 0x23d   :  { %1172 = vmatmul.msk.f32.vlgmr.msrb.gmra.mxu0 %vm267_vm1, %v367_v53  ;;  %v799_v56 = vsel %vm267_vm1, %v1712_v55, 0.0 }
 0x23e   :  { %800 = vadd.xlane.f32.xlu2 %v799_v56 }
 0x240   :  { %v520_v57 = vpop.permute.xlu1 %519 }
 0x241   :  { %540 = vmatpush.msrb.mxu3 %v520_v57 }
 0x244   :  { %v677_v58 = vpop.permute.xlu0 %676 }
 0x245   :  { %697 = vmatpush.msra.mxu3 %v677_v58 }
 0x246   :  { %832 = vrot.lane.b32.xlu1 %v1650_v22, %s1512_s28 }
 0x249   :  { %702 = vrot.lane.b32.xlu0 %v1668_v39, %s1510_s9 }
 0x24e   :  { %858 = vrot.lane.b32.xlu1 %v1668_v39, %s1512_s28 }
 0x256   :  { %546 = vrot.lane.b32.xlu2 %v1668_v39, %s1511_s21 }
 0x298   :  { %v484_v54 = vpop.xlane.xlu2 %483 }
 0x299   :  { %1254 = vrcp.f32 %v484_v54  ;;  %v499_v1 = vand.u32 2147483648, %v484_v54  ;;  %vm493_vm11 = vweird.f32 %v484_v54  ;;  %v497_v3 = vand.u32 2147483647, %v484_v54 }
 0x29b   :  { %v500_v12 = vor.u32 1.1754944e-38, %v499_v1  ;;  %vm498_vm13 = vcmp.eq.f32.partialorder %v497_v3, 8.507059e+37 }
 0x29f   :  { %v1255_v59 = vpop.eup %1254 }
 0x2a0   :  { %v489_v60 = vmul.f32 %v1255_v59, %v484_v54  ;;  %v642_v61 = vpop.xlane.xlu1 %641  ;;  %vm494_vm10 = vweird.f32 %v1255_v59 }
 0x2a1   :  { %1256 = vrcp.f32 %v642_v61  ;;  %v487_v62 = vpop.xlane.xlu2 %486  ;;  %vm1725_vm12 = vmor %vm493_vm11, %vm494_vm10  ;;  %v657_v15 = vand.u32 2147483648, %v642_v61  ;;  %v655_v18 = vand.u32 2147483647, %v642_v61  ;;  %vm651_vm15 = vweird.f32 %v642_v61 }
 0x2a2   :  { %v490_v63 = vsub.f32 1.0, %v489_v60  ;;  %1258 = vrcp.f32 %v487_v62  ;;  %v513_v31 = vand.u32 2147483648, %v487_v62  ;;  %vm507_vm5 = vweird.f32 %v487_v62 }
 0x2a3   :  { %v658_v27 = vor.u32 1.1754944e-38, %v657_v15  ;;  %vm656_vm4 = vcmp.eq.f32.partialorder %v655_v18, 8.507059e+37  ;;  %v511_v34 = vand.u32 2147483647, %v487_v62 }
 0x2a4   :  { %v491_v0 = vmul.f32 %v1255_v59, %v490_v63  ;;  %v514_v44 = vor.u32 1.1754944e-38, %v513_v31 }
 0x2a5   :  { %vm512_vm8 = vcmp.eq.f32.partialorder %v511_v34, 8.507059e+37 }
 0x2a6   :  { %v492_v22 = vadd.f32 %v1255_v59, %v491_v0 }
 0x2a7   :  { %v1257_v2 = vpop.eup %1256 }
 0x2a8   :  { %v1259_v4 = vpop.eup %1258  ;;  %v647_v39 = vmul.f32 %v1257_v2, %v642_v61  ;;  %v798_v7 = vpop.xlane.xlu0 %797  ;;  %v496_v11 = vsel %vm1725_vm12, %v1255_v59, %v492_v22  ;;  %vm652_vm14 = vweird.f32 %v1257_v2 }
 0x2a9   :  { %v503_v9 = vmul.f32 %v1259_v4, %v487_v62  ;;  %1260 = vrcp.f32 %v798_v7  ;;  %v1729_v10 = vpop.xlane.xlu2 %644  ;;  %v501_v19 = vsel %vm498_vm13, %v500_v12, %v496_v11  ;;  %vm653_vm2 = vmor %vm651_vm15, %vm652_vm14  ;;  %vm508_vm3 = vweird.f32 %v1259_v4 }
 0x2aa   :  { %v648_v13 = vsub.f32 1.0, %v647_v39  ;;  %1262 = vrcp.f32 %v1729_v10  ;;  %v516_v23 = vmul.f32 %v1689_v6, %v501_v19  ;;  %vm509_vm6 = vmor %vm507_vm5, %vm508_vm3  ;;  %v813_v38 = vand.u32 2147483648, %v798_v7  ;;  %v918_v19 = vld [vmem:[#allocation13 + $0x10] sm:$0xff] }
 0x2ab   :  { %v504_v16 = vsub.f32 1.0, %v503_v9  ;;  %v811_v46 = vand.u32 2147483647, %v798_v7  ;;  %vm807_vm9 = vweird.f32 %v798_v7  ;;  %vm665_vm13 = vweird.f32 %v1729_v10 }
 0x2ac   :  { %v649_v17 = vmul.f32 %v1257_v2, %v648_v13  ;;  %1177 = vmatmul.msk.f32.vlgmr.msrb.gmra.mxu3 %vm267_vm1, %v516_v23  ;;  %v814_v50 = vor.u32 1.1754944e-38, %v813_v38  ;;  %v669_v58 = vand.u32 2147483647, %v1729_v10  ;;  %v916_v23 = vld [vmem:[#allocation13] sm:$0xff] }
 0x2ad   :  { %v505_v21 = vmul.f32 %v1259_v4, %v504_v16  ;;  %vm812_vm12 = vcmp.eq.f32.partialorder %v811_v46, 8.507059e+37 }
 0x2ae   :  { %v650_v24 = vadd.f32 %v1257_v2, %v649_v17  ;;  %vm670_vm15 = vcmp.eq.f32.partialorder %v669_v58, 8.507059e+37 }
 0x2af   :  { %v1261_v26 = vpop.eup %1260  ;;  %v506_v28 = vadd.f32 %v1259_v4, %v505_v21  ;;  %v917_v21 = vld [vmem:[#allocation13 + $0x8] sm:$0xff] }
 0x2b0   :  { %v1263_v29 = vpop.eup %1262  ;;  %v654_v30 = vsel %vm653_vm2, %v1257_v2, %v650_v24  ;;  %v803_v32 = vmul.f32 %v1261_v26, %v798_v7  ;;  %vm808_vm7 = vweird.f32 %v1261_v26 }
 0x2b1   :  { %v659_v33 = vsel %vm656_vm4, %v658_v27, %v654_v30  ;;  %v661_v35 = vmul.f32 %v1263_v29, %v1729_v10  ;;  %v801_v6 = vpop.xlane.xlu2 %800  ;;  %v510_v37 = vsel %vm509_vm6, %v1259_v4, %v506_v28  ;;  %vm809_vm10 = vmor %vm807_vm9, %vm808_vm7  ;;  %vm666_vm11 = vweird.f32 %v1263_v29 }
 0x2b2   :  { %v804_v36 = vsub.f32 1.0, %v803_v32  ;;  %1264 = vrcp.f32 %v801_v6  ;;  %v674_v43 = vmul.f32 %v1693_v20, %v659_v33  ;;  %v515_v49 = vsel %vm512_vm8, %v514_v44, %v510_v37  ;;  %vm667_vm14 = vmor %vm665_vm13, %vm666_vm11 }
 0x2b3   :  { %v662_v41 = vsub.f32 1.0, %v661_v35  ;;  %v671_v20 = vand.u32 2147483648, %v1729_v10  ;;  %v517_v60 = vmul.f32 %v1695_v25, %v515_v49  ;;  %v827_v4 = vand.u32 2147483648, %v801_v6 }
 0x2b4   :  { %v805_v45 = vmul.f32 %v1261_v26, %v804_v36  ;;  %1183 = vmatmul.msk.f32.vlgmr.msra.gmra.mxu3 %vm267_vm1, %v674_v43  ;;  %vm821_vm3 = vweird.f32 %v801_v6  ;;  %v825_v5 = vand.u32 2147483647, %v801_v6  ;;  %vm910_vm6 = vcmask 130048  }
 0x2b5   :  { %v663_v47 = vmul.f32 %v1263_v29, %v662_v41  ;;  %v672_v22 = vor.u32 1.1754944e-38, %v671_v20  ;;  %vm913_vm7 = vcmask 195584  }
 0x2b6   :  { %v806_v48 = vadd.f32 %v1261_v26, %v805_v45  ;;  %vm826_vm5 = vcmp.eq.f32.partialorder %v825_v5, 8.507059e+37  ;;  %v1515_v45 = vmov 32.0  }
 0x2b7   :  { %v664_v51 = vadd.f32 %v1263_v29, %v663_v47  ;;  %v388_v11 = vpop.f32.mrf.mxu3  ;;  %1266 = vrcp.f32 %v1515_v45 }
 0x2b8   :  { %v1265_v52 = vpop.eup %1264  ;;  %v810_v53 = vsel %vm809_vm10, %v1261_v26, %v806_v48  ;;  %v833_v56 = vpop.permute.xlu1 %832 }
 0x2b9   :  { %v815_v57 = vsel %vm812_vm12, %v814_v50, %v810_v53  ;;  %v817_v54 = vmul.f32 %v1265_v52, %v801_v6  ;;  %v547_v59 = vpop.permute.xlu2 %546  ;;  %853 = vmatpush.msrb.mxu3 %v833_v56  ;;  %v668_v61 = vsel %vm667_vm14, %v1263_v29, %v664_v51  ;;  %vm822_vm2 = vweird.f32 %v1265_v52 }
 0x2ba   :  { %567 = vmatpush.msra.mxu0 %v547_v59  ;;  %v830_v0 = vmul.f32 %v1702_v40, %v815_v57  ;;  %v673_v2 = vsel %vm670_vm15, %v672_v22, %v668_v61  ;;  %vm823_vm4 = vmor %vm821_vm3, %vm822_vm2  ;;  %v828_v40 = vor.u32 1.1754944e-38, %v827_v4  ;;  %v411_v12 = vpop.f32.mrf.mxu0  ;;  %vm1017_vm14 = vcmask 1041409  }
 0x2bb   :  { %v818_v62 = vsub.f32 1.0, %v817_v54  ;;  %1178 = vmatmul.msk.f32.vlgmr.msra.gmra.mxu0 %vm267_vm1, %v517_v60  ;;  %v703_v63 = vpop.permute.xlu0 %702  ;;  %v675_v39 = vmul.f32 %v1704_v42, %v673_v2  ;;  %v1082_v2 = vld [vmem:[#allocation14 + $0x78] sm:$0xff]  ;;  %vm1060_vm15 = vcmask 523264   ;;  %vm1062_vm2 = vcmask 785408  }
 0x2bc   :  { %723 = vmatpush.msrb.mxu0 %v703_v63  ;;  %1189 = vmatmul.msk.f32.vlgmr.msrb.gmra.mxu3 %vm267_vm1, %v830_v0 }
 0x2bd   :  { %v819_v1 = vmul.f32 %v1265_v52, %v818_v62  ;;  %v1267_v46 = vpop.eup %1266  ;;  %1099 = vmatpush.msra.mxu2 %v1082_v2  ;;  %v1073_v2 = vld [vmem:[#allocation14 + $0x30] sm:$0xff] }
 0x2be   :  { %v958_v47 = vmul.f32 32.0, %v1267_v46 }
 0x2bf   :  { %v820_v3 = vadd.f32 %v1265_v52, %v819_v1 }
 0x2c0   :  { %v859_v25 = vpop.permute.xlu1 %858  ;;  %v959_v49 = vsub.f32 1.0, %v958_v47 }
 0x2c1   :  { %879 = vmatpush.msra.mxu0 %v859_v25  ;;  %v824_v7 = vsel %vm823_vm4, %v1265_v52, %v820_v3  ;;  %v1098_v3 = vld [vmem:[#allocation14 + $0xf8] sm:$0xff] }
 0x2c2   :  { %v829_v9 = vsel %vm826_vm5, %v828_v40, %v824_v7  ;;  %v960_v48 = vmul.f32 %v1267_v46, %v959_v49  ;;  %1119 = vmatpush.msra.mxu3 %v1098_v3  ;;  %v1089_v3 = vld [vmem:[#allocation14 + $0xb0] sm:$0xff] }
 0x2c3   :  { %1184 = vmatmul.msk.f32.vlgmr.msrb.gmra.mxu0 %vm267_vm1, %v675_v39  ;;  %v831_v10 = vmul.f32 %v1712_v55, %v829_v9  ;;  %v919_v55 = vld [vmem:[#allocation13 + $0x18] sm:$0xff] }
 0x2c4   :  { %938 = vmatpush.msrb.mxu1 %v919_v55  ;;  %v961_v50 = vadd.f32 %v1267_v46, %v960_v48 }
 0x2c6   :  { %939 = vmatpush.msrb.mxu1 %v918_v19 }
 0x2c8   :  { %940 = vmatpush.msrb.mxu1 %v917_v21 }
 0x2ca   :  { %941 = vmatpush.msrb.mxu1 %v916_v23 }
 0x2cb   :  { %1190 = vmatmul.msk.f32.vlgmr.msra.gmra.mxu0 %vm267_vm1, %v831_v10 }
 0x32f   :  { %v542_v13 = vpop.f32.mrf.mxu3 }
 0x330   :  { %886 = vrot.lane.b32.xlu0 %v542_v13, %s1502_s22 }
 0x337   :  { %v699_v42 = vpop.f32.mrf.mxu3 }
 0x338   :  { %v569_v15 = vpop.f32.mrf.mxu0  ;;  %894 = vrot.lane.b32.xlu1 %v699_v42, %s1513_s29 }
 0x339   :  { %888 = vrot.lane.b32.xlu2 %v569_v15, %s1502_s22 }
 0x33f   :  { %v855_v17 = vpop.f32.mrf.mxu3 }
 0x340   :  { %v725_v16 = vpop.f32.mrf.mxu0  ;;  %902 = vrot.lane.b32.xlu0 %v855_v17, %s1514_s30 }
 0x341   :  { %896 = vrot.lane.b32.xlu1 %v725_v16, %s1513_s29  ;;  %v1233_v16 = vld [vmem:[%s1795_s8] ss:$0 sm:$0xff]  ;;  %s1517_s8 = smov 64  }
 0x348   :  { %v881_v18 = vpop.f32.mrf.mxu0 }
 0x349   :  { %904 = vrot.lane.b32.xlu0 %v881_v18, %s1514_s30 }
 0x393   :  { %v889_v31 = vpop.permute.xlu2 %888 }
 0x394   :  { %v909_v33 = vsel %vm267_vm1, %v411_v12, %v889_v31  ;;  %v1232_v12 = vld [vmem:[%s1794_s7] ss:$0 sm:$0xff]  ;;  %s1516_s7 = smov 96  }
 0x3a2   :  { %v887_v24 = vpop.permute.xlu0 %886 }
 0x3a3   :  { %v908_v27 = vsel %vm267_vm1, %v388_v11, %v887_v24  ;;  %vm962_vm1 = vweird.f32 %v1267_v46 }
 0x3a4   :  { %v963_v51 = vsel %vm962_vm1, %v1267_v46, %v961_v50 }
 0x3aa   :  { %v895_v26 = vpop.permute.xlu1 %894 }
 0x3ab   :  { %v911_v28 = vsel %vm910_vm6, %v908_v27, %v895_v26 }
 0x3b2   :  { %v903_v29 = vpop.permute.xlu0 %902 }
 0x3b3   :  { %v914_v30 = vsel %vm913_vm7, %v911_v28, %v903_v29  ;;  %v897_v32 = vpop.permute.xlu1 %896 }
 0x3b4   :  { %1191 = vmatmul.msk.f32.vlgmr.msrb.gmra.mxu1 %vm171_vm0, %v914_v30  ;;  %v912_v34 = vsel %vm910_vm6, %v909_v33, %v897_v32 }
 0x3bb   :  { %v905_v35 = vpop.permute.xlu0 %904 }
 0x3bc   :  { %v915_v6 = vsel %vm913_vm7, %v912_v34, %v905_v35 }
 0x3bd   :  { %1192 = vmatmul.msk.f32.gmra.mxu1 %vm171_vm0, %v915_v6 }
 0x431   :  { %v943_v36 = vpop.f32.mrf.mxu1 }
 0x432   :  { %v949_v37 = vadd.f32 %v943_v36, %v1623_v8 }
 0x434   :  { %v951_v38 = vsel %vm171_vm0, %v949_v37, 0.0 }
 0x435   :  { %952 = vadd.xlane.f32.xlu2 %v951_v38 }
 0x43a   :  { %v946_v41 = vpop.f32.mrf.mxu1 }
 0x43b   :  { %v950_v43 = vadd.f32 %v946_v41, %v1628_v14 }
 0x43d   :  { %v954_v44 = vsel %vm171_vm0, %v950_v43, 0.0 }
 0x43e   :  { %955 = vadd.xlane.f32.xlu1 %v954_v44 }
 0x4a8   :  { %v953_v52 = vpop.xlane.xlu2 %952 }
 0x4a9   :  { %v964_v8 = vmul.f32 %v963_v51, %v953_v52 }
 0x4ab   :  { %v966_v53 = vsub.f32 %v949_v37, %v964_v8  ;;  %v1081_v8 = vld [vmem:[#allocation14 + $0x70] sm:$0xff] }
 0x4ac   :  { %1100 = vmatpush.msra.mxu2 %v1081_v8 }
 0x4ad   :  { %v968_v20 = vmul.f32 %v966_v53, %v966_v53 }
 0x4af   :  { %v970_v56 = vsel %vm171_vm0, %v968_v20, 0.0  ;;  %v1080_v20 = vld [vmem:[#allocation14 + $0x68] sm:$0xff] }
 0x4b0   :  { %971 = vadd.xlane.f32.xlu0 %v970_v56  ;;  %v1096_v56 = vld [vmem:[#allocation14 + $0xe8] sm:$0xff]  ;;  %1101 = vmatpush.msra.mxu2 %v1080_v20 }
 0x4b1   :  { %v956_v14 = vpop.xlane.xlu1 %955 }
 0x4b2   :  { %v965_v57 = vmul.f32 %v963_v51, %v956_v14  ;;  %v1079_v14 = vld [vmem:[#allocation14 + $0x60] sm:$0xff] }
 0x4b3   :  { %1102 = vmatpush.msra.mxu2 %v1079_v14 }
 0x4b4   :  { %v967_v58 = vsub.f32 %v950_v43, %v965_v57  ;;  %v1095_v57 = vld [vmem:[#allocation14 + $0xe0] sm:$0xff] }
 0x4b6   :  { %v969_v54 = vmul.f32 %v967_v58, %v967_v58 }
 0x4b8   :  { %v973_v59 = vsel %vm171_vm0, %v969_v54, 0.0  ;;  %v1094_v54 = vld [vmem:[#allocation14 + $0xd8] sm:$0xff] }
 0x4b9   :  { %974 = vadd.xlane.f32.xlu2 %v973_v59  ;;  %v1077_v59 = vld [vmem:[#allocation14 + $0x50] sm:$0xff] }
 0x523   :  { %v972_v60 = vpop.xlane.xlu0 %971 }
 0x524   :  { %v976_v61 = vmul.f32 %v972_v60, %v963_v51  ;;  %v1093_v60 = vld [vmem:[#allocation14 + $0xd0] sm:$0xff] }
 0x526   :  { %v978_v62 = vadd.f32 1e-05, %v976_v61  ;;  %v1076_v61 = vld [vmem:[#allocation14 + $0x48] sm:$0xff] }
 0x528   :  { %1268 = vrsqrt.f32 %v978_v62  ;;  %vm986_vm9 = vweird.f32 %v978_v62 }
 0x52c   :  { %v975_v63 = vpop.xlane.xlu2 %974 }
 0x52d   :  { %v977_v0 = vmul.f32 %v975_v63, %v963_v51  ;;  %v1075_v63 = vld [vmem:[#allocation14 + $0x40] sm:$0xff] }
 0x52e   :  { %v1269_v22 = vpop.eup %1268 }
 0x52f   :  { %v979_v1 = vadd.f32 1e-05, %v977_v0  ;;  %v981_v4 = vmul.f32 %v1269_v22, %v978_v62  ;;  %vm987_vm8 = vweird.f32 %v1269_v22  ;;  %v1092_v62 = vld [vmem:[#allocation14 + $0xc8] sm:$0xff]  ;;  %v1091_v0 = vld [vmem:[#allocation14 + $0xc0] sm:$0xff] }
 0x530   :  { %vm988_vm10 = vmor %vm986_vm9, %vm987_vm8 }
 0x531   :  { %1270 = vrsqrt.f32 %v979_v1  ;;  %v982_v25 = vmul.f32 %v1269_v22, %v981_v4  ;;  %vm996_vm12 = vweird.f32 %v979_v1  ;;  %v1072_v4 = vld [vmem:[#allocation14 + $0x28] sm:$0xff] }
 0x533   :  { %v983_v5 = vmul.f32 0.5, %v982_v25  ;;  %v1088_v25 = vld [vmem:[#allocation14 + $0xa8] sm:$0xff] }
 0x535   :  { %v984_v39 = vsub.f32 1.5, %v983_v5  ;;  %v1071_v5 = vld [vmem:[#allocation14 + $0x20] sm:$0xff] }
 0x537   :  { %v1271_v7 = vpop.eup %1270  ;;  %v985_v40 = vmul.f32 %v1269_v22, %v984_v39  ;;  %v1087_v39 = vld [vmem:[#allocation14 + $0xa0] sm:$0xff] }
 0x538   :  { %v991_v9 = vmul.f32 %v1271_v7, %v979_v1  ;;  %vm997_vm11 = vweird.f32 %v1271_v7  ;;  %v1090_v1 = vld [vmem:[#allocation14 + $0xb8] sm:$0xff] }
 0x539   :  { %v989_v10 = vsel %vm988_vm10, %v1269_v22, %v985_v40  ;;  %vm998_vm13 = vmor %vm996_vm12, %vm997_vm11  ;;  %v1074_v22 = vld [vmem:[#allocation14 + $0x38] sm:$0xff] }
 0x53a   :  { %v992_v11 = vmul.f32 %v1271_v7, %v991_v9  ;;  %v1000_v13 = vmul.f32 %v989_v10, %v966_v53  ;;  %v1097_v53 = vld [vmem:[#allocation14 + $0xf0] sm:$0xff]  ;;  %v1086_v40 = vld [vmem:[#allocation14 + $0x98] sm:$0xff] }
 0x53b   :  { %1120 = vmatpush.msra.mxu3 %v1097_v53  ;;  %v1069_v9 = vld [vmem:[#allocation14 + $0x10] sm:$0xff] }
 0x53c   :  { %v993_v15 = vmul.f32 0.5, %v992_v11  ;;  %v1006_v17 = vmul.f32 %v1232_v12, %v1000_v13  ;;  %v1085_v10 = vld [vmem:[#allocation14 + $0x90] sm:$0xff]  ;;  %v1068_v11 = vld [vmem:[#allocation14 + $0x8] sm:$0xff]  ;;  %v1067_v13 = vld [vmem:[#allocation14] sm:$0xff] }
 0x53d   :  { %1121 = vmatpush.msra.mxu3 %v1096_v56 }
 0x53e   :  { %v994_v42 = vsub.f32 1.5, %v993_v15  ;;  %v1012_v19 = vadd.f32 %v1233_v16, %v1006_v17  ;;  %v1083_v15 = vld [vmem:[#allocation14 + $0x80] sm:$0xff] }
 0x53f   :  { %1122 = vmatpush.msra.mxu3 %v1095_v57 }
 0x540   :  { %v995_v18 = vmul.f32 %v1271_v7, %v994_v42  ;;  %v1031_v26 = vrot.slane %v1012_v19, 3  ;;  %v1053_v27 = vrot.slane %v1012_v19, 7  ;;  %v1025_v28 = vrot.slane %v1012_v19, 2 }
 0x541   :  { %v1047_v29 = vrot.slane %v1012_v19, 6  ;;  %v1020_v30 = vrot.slane %v1012_v19, 1  ;;  %v1041_v31 = vrot.slane %v1012_v19, 5  ;;  %v1037_v32 = vrot.slane %v1012_v19, 4  ;;  %1123 = vmatpush.msra.mxu3 %v1094_v54 }
 0x542   :  { %v999_v55 = vsel %vm998_vm13, %v1271_v7, %v995_v18  ;;  %v1070_v7 = vld [vmem:[#allocation14 + $0x18] sm:$0xff] }
 0x543   :  { %v1001_v21 = vmul.f32 %v999_v55, %v967_v58  ;;  %v1078_v58 = vld [vmem:[#allocation14 + $0x58] sm:$0xff]  ;;  %1124 = vmatpush.msra.mxu3 %v1093_v60 }
 0x544   :  { %1103 = vmatpush.msra.mxu2 %v1078_v58 }
 0x545   :  { %v1007_v23 = vmul.f32 %v1232_v12, %v1001_v21  ;;  %1125 = vmatpush.msra.mxu3 %v1092_v62  ;;  %v1084_v12 = vld [vmem:[#allocation14 + $0x88] sm:$0xff] }
 0x546   :  { %1104 = vmatpush.msra.mxu2 %v1077_v59 }
 0x547   :  { %v1013_v24 = vadd.f32 %v1233_v16, %v1007_v23  ;;  %1126 = vmatpush.msra.mxu3 %v1091_v0 }
 0x548   :  { %1105 = vmatpush.msra.mxu2 %v1076_v61 }
 0x549   :  { %v1032_v33 = vrot.slane %v1013_v24, 2  ;;  %v1054_v34 = vrot.slane %v1013_v24, 6  ;;  %v1026_v35 = vrot.slane %v1013_v24, 1  ;;  %v1048_v6 = vrot.slane %v1013_v24, 5  ;;  %1127 = vmatpush.msra.mxu3 %v1090_v1 }
 0x54a   :  { %v1021_v36 = vsel %vm1017_vm14, %v1013_v24, %v1020_v30  ;;  %v1042_v37 = vrot.slane %v1013_v24, 4  ;;  %v1016_v38 = vrot.slane %v1013_v24, 7  ;;  %v1038_v41 = vrot.slane %v1013_v24, 3  ;;  %1106 = vmatpush.msra.mxu2 %v1075_v63 }
 0x54b   :  { %v1033_v43 = vsel %vm1017_vm14, %v1032_v33, %v1031_v26  ;;  %v1055_v44 = vsel %vm1017_vm14, %v1054_v34, %v1053_v27  ;;  %v1027_v45 = vsel %vm1017_vm14, %v1026_v35, %v1025_v28  ;;  %v1049_v46 = vsel %vm1017_vm14, %v1048_v6, %v1047_v29  ;;  %1128 = vmatpush.msra.mxu3 %v1089_v3 }
 0x54c   :  { %v1227_v47 = vpack.i.bf16 %v1055_v44, %v1033_v43  ;;  %v1222_v49 = vpack.i.bf16 %v1049_v46, %v1027_v45  ;;  %v1043_v48 = vsel %vm1017_vm14, %v1042_v37, %v1041_v31  ;;  %v1775_v50 = vsel %vm1017_vm14, %v1038_v41, %v1037_v32  ;;  %1107 = vmatpush.msra.mxu2 %v1074_v22 }
 0x54d   :  { %v1217_v51 = vpack.i.bf16 %v1043_v48, %v1021_v36  ;;  %v1778_v52 = vsel %vm1017_vm14, %v1016_v38, %v1012_v19  ;;  %1129 = vmatpush.msra.mxu3 %v1088_v25 }
 0x54e   :  { %1228 = vrot.lane.b32.xlu2 %v1227_v47, %s1516_s7  ;;  %1223 = vrot.lane.b32.xlu0 %v1222_v49, %s1517_s8 }
 0x54f   :  { %1218 = vrot.lane.b32.xlu1 %v1217_v51, %s1518_s13  ;;  %1108 = vmatpush.msra.mxu2 %v1073_v2 }
 0x550   :  { %1130 = vmatpush.msra.mxu3 %v1087_v39 }
 0x551   :  { %1109 = vmatpush.msra.mxu2 %v1072_v4 }
 0x552   :  { %1131 = vmatpush.msra.mxu3 %v1086_v40 }
 0x553   :  { %1110 = vmatpush.msra.mxu2 %v1071_v5 }
 0x554   :  { %1132 = vmatpush.msra.mxu3 %v1085_v10 }
 0x555   :  { %1111 = vmatpush.msra.mxu2 %v1070_v7 }
 0x556   :  { %1133 = vmatpush.msra.mxu3 %v1084_v12 }
 0x557   :  { %1112 = vmatpush.msra.mxu2 %v1069_v9 }
 0x558   :  { %1134 = vmatpush.msra.mxu3 %v1083_v15 }
 0x559   :  { %1113 = vmatpush.msra.mxu2 %v1068_v11 }
 0x55b   :  { %1114 = vmatpush.msra.mxu2 %v1067_v13 }
 0x5a8   :  { %v1229_v16 = vpop.permute.xlu2 %1228 }
 0x5a9   :  { %v1231_v23 = vunpack.i.h.bf16 %v1229_v16  ;;  %v1230_v24 = vunpack.i.l.bf16 %v1229_v16 }
 0x5c0   :  { %v1224_v42 = vpop.permute.xlu0 %1223 }
 0x5c1   :  { %v1226_v17 = vunpack.i.h.bf16 %v1224_v42  ;;  %v1225_v18 = vunpack.i.l.bf16 %v1224_v42  ;;  %v1219_v55 = vpop.permute.xlu1 %1218 }
 0x5c2   :  { %v1221_v19 = vunpack.i.h.bf16 %v1219_v55  ;;  %v1220_v21 = vunpack.i.l.bf16 %v1219_v55 }
 0x5c4   :  { %v1064_v26 = vsel %vm171_vm0, %v1775_v50, %v1221_v19  ;;  %v1059_v27 = vsel %vm171_vm0, %v1778_v52, %v1220_v21 }
 0x5c5   :  { %v1061_v28 = vsel %vm1060_vm15, %v1059_v27, %v1225_v18  ;;  %v1065_v29 = vsel %vm1060_vm15, %v1064_v26, %v1226_v17 }
 0x5c6   :  { %v1063_v30 = vsel %vm1062_vm2, %v1061_v28, %v1230_v24  ;;  %v1066_v31 = vsel %vm1062_vm2, %v1065_v29, %v1231_v23 }
 0x5c7   :  { %1115 = vmatmul.f32.vlgmr.msra.gmra.mxu2 %v1063_v30  ;;  %1135 = vmatmul.f32.vlgmr.msra.gmra.mxu3 %v1066_v31 }
 0x64a   :  { %v1116_v32 = vpop.f32.mrf.mxu2  ;;  %v1136_v33 = vpop.f32.mrf.mxu3 }
 0x64b   :  { %v1137_v34 = vadd.f32 %v1136_v33, %v1116_v32 }
 0x64d   :  { %1139 = vst [vmem:[#allocation16] sm:$0x3] %v1137_v34 }
 0x64e   :  { %1150 = dma.vmem_to_hbm [thread:$0]  %s1146_s0, 32, %s1148_s17, [#allocation4]  }
 0x64f   :  { %1498 = dma.done.wait [#allocation4], 32  }
 0x650   :  { %1499 = vsyncadd [#allocation4], 4294967264 }
 0x651   :  { %1155 = vsyncpa [#allocation3], 1 }
 0x652   :  { %1156 = vsyncpa [#allocation6], 1 }
 0x653   :  { %1157 = vsyncpa [#allocation9], 1 }
 0x654   :  { %1158 = vsyncpa [#allocation12], 1 }
 0x655   :  { %1159 = vsyncpa [#allocation15], 1 }
 0x656   :  { %1160 = vsyncpa [#allocation4], 1 }

</bundles_post_ra>
